<compile_context>
chip_gen: v7x
topology: tpu7x:2x2x1
jax: 0.10.0
libtpu: 0.0.40
codegen_flags: <defaults>
</compile_context>

<pallas_src>
import jax
import jax.numpy as jnp
from jax import lax
from jax.experimental import pallas as pl
from jax.experimental.pallas import tpu as pltpu


def _lstm_kernel(x_ref, wih_ref, whh_ref, b_ref, out_ref, gx_scr):
    """Whole-sequence LSTM in one kernel invocation.

    x_ref   : (S*N, C)   bf16  seq-major inputs, flattened over (time, batch)
    wih_ref : (C, 4H)    bf16  W_ih^T
    whh_ref : (H, 4H)    bf16  W_hh^T
    b_ref   : (1, 4H)    f32   b_ih + b_hh
    out_ref : (S, N, H)  f32   hidden-state outputs
    gx_scr  : (S*N, 4H)  f32   hoisted input projection (VMEM scratch)
    """
    S, N, H = out_ref.shape

    # ---- Hoisted input-side projection: one dense MXU pass over all steps ----
    gx_scr[...] = (
        jnp.dot(x_ref[...], wih_ref[...], preferred_element_type=jnp.float32)
        + b_ref[...]
    )

    whh = whh_ref[...]                                   # (H, 4H) bf16, hoisted load

    def step(t, carry):
        h_prev, c_prev = carry                           # (N, H) f32 each
        row = pl.multiple_of(t * N, N)                   # sublane-aligned offset
        gx_t = gx_scr[pl.ds(row, N), :]                  # (N, 4H) f32

        # Only the recurrent projection remains on the serial critical path:
        # bf16 operands, f32 MXU accumulation.
        gates = gx_t + jnp.dot(h_prev.astype(whh.dtype), whh,
                               preferred_element_type=jnp.float32)

        # PyTorch gate order: i, f, g, o.  Elementwise math stays f32
        # (sigmoid/tanh ride the EUP slot on all chips; v5e has no bf16 VPU).
        i_g = jax.nn.sigmoid(gates[:, 0 * H:1 * H])
        f_g = jax.nn.sigmoid(gates[:, 1 * H:2 * H])
        g_g = jnp.tanh(gates[:, 2 * H:3 * H])
        o_g = jax.nn.sigmoid(gates[:, 3 * H:4 * H])

        c_new = f_g * c_prev + i_g * g_g
        h_new = o_g * jnp.tanh(c_new)

        out_ref[pl.ds(t, 1), :, :] = h_new[None].astype(out_ref.dtype)
        return (h_new, c_new)

    h0 = jnp.zeros((N, H), jnp.float32)
    c0 = jnp.zeros((N, H), jnp.float32)
    # Small static trip count -> fully unroll so the LLO scheduler can overlap
    # the non-dependent work of consecutive steps.
    lax.fori_loop(0, S, step, (h0, c0), unroll=True)


def lstm_pallas(x_seq, w_ih, w_hh, b_ih, b_hh):
    """x_seq: (S, N, C) seq-major f32. Returns out: (S, N, H) f32."""
    S, N, C = x_seq.shape
    H4 = w_ih.shape[0]
    H = H4 // 4

    # bf16 MXU operands; accumulation and gate math stay f32 inside the kernel.
    x2d = jnp.reshape(x_seq, (S * N, C)).astype(jnp.bfloat16)
    wih_t = jnp.transpose(w_ih).astype(jnp.bfloat16)     # (C, 4H)
    whh_t = jnp.transpose(w_hh).astype(jnp.bfloat16)     # (H, 4H)
    bias = (b_ih + b_hh).reshape(1, 4 * H).astype(jnp.float32)

    out = pl.pallas_call(
        _lstm_kernel,
        out_shape=jax.ShapeDtypeStruct((S, N, H), jnp.float32),
        grid_spec=pltpu.PrefetchScalarGridSpec(
            num_scalar_prefetch=0,
            grid=(1,),                                    # time loop is in-kernel
            in_specs=[
                pl.BlockSpec((S * N, C), lambda i: (0, 0)),
                pl.BlockSpec((C, 4 * H), lambda i: (0, 0)),
                pl.BlockSpec((H, 4 * H), lambda i: (0, 0)),
                pl.BlockSpec((1, 4 * H), lambda i: (0, 0)),
            ],
            out_specs=pl.BlockSpec((S, N, H), lambda i: (0, 0, 0)),
            scratch_shapes=[
                pltpu.VMEM((S * N, 4 * H), jnp.float32),  # hoisted Gx
            ],
        ),
        compiler_params=pltpu.CompilerParams(
            dimension_semantics=("arbitrary",)),          # recurrence is serial
    )(x2d, wih_t, whh_t, bias)
    return out


def temporal_imputer_forward(x, params, num_channels):
    """Exact semantics of myTemporal_Imputer.forward.

    x: (B, C, L) float32 (PyTorch NCL layout).
    returns: out.view(B, num_channels, -1), same row-major reshape as torch.
    """
    B = x.shape[0]
    # x.view(B, -1, num_channels): row-major reshape (bug-compatible with torch).
    x_seq = jnp.reshape(x, (B, -1, num_channels))        # (S=B, N, C)
    out = lstm_pallas(x_seq, params["w_ih"], params["w_hh"],
                      params["b_ih"], params["b_hh"])    # (S, N, H)
    # out.view(B, num_channels, -1): row-major reshape.
    return jnp.reshape(out, (B, num_channels, -1))


def _lstm_reference(x_seq, w_ih, w_hh, b_ih, b_hh):
    """Pure-JAX f32 reference of torch.nn.LSTM (single layer, zero init state)."""
    S, N, C = x_seq.shape
    H = w_hh.shape[1]
    h = jnp.zeros((N, H), jnp.float32)
    c = jnp.zeros((N, H), jnp.float32)
    outs = []
    for t in range(S):
        gates = x_seq[t] @ w_ih.T + h @ w_hh.T + b_ih + b_hh
        i_g = jax.nn.sigmoid(gates[:, 0 * H:1 * H])
        f_g = jax.nn.sigmoid(gates[:, 1 * H:2 * H])
        g_g = jnp.tanh(gates[:, 2 * H:3 * H])
        o_g = jax.nn.sigmoid(gates[:, 3 * H:4 * H])
        c = f_g * c + i_g * g_g
        h = o_g * jnp.tanh(c)
        outs.append(h)
    return jnp.stack(outs, axis=0)


if __name__ == "__main__":
    # configs: features_len=8, final_out_channels=32, AR_hid_dim=32
    B, C, L, H = 2, 32, 8, 32

    key = jax.random.PRNGKey(0)
    kx, k1, k2, k3, k4 = jax.random.split(key, 5)

    x = jax.random.normal(kx, (B, C, L), dtype=jnp.float32)

    # Deterministic parameter init (shapes match torch.nn.LSTM(C, H)).
    scale = 1.0 / jnp.sqrt(jnp.float32(H))
    params = {
        "w_ih": jax.random.uniform(k1, (4 * H, C), jnp.float32, -scale, scale),
        "w_hh": jax.random.uniform(k2, (4 * H, H), jnp.float32, -scale, scale),
        "b_ih": jax.random.uniform(k3, (4 * H,), jnp.float32, -scale, scale),
        "b_hh": jax.random.uniform(k4, (4 * H,), jnp.float32, -scale, scale),
    }

    out = temporal_imputer_forward(x, params, num_channels=C)
    out = jax.block_until_ready(out)

    # Correctness check against a pure-f32 JAX reference of the PyTorch
    # semantics.  The kernel uses bf16 MXU operands (f32 accumulation and f32
    # gate math), so the comparison uses a bf16-appropriate tolerance.
    x_seq = jnp.reshape(x, (B, -1, C))
    ref = _lstm_reference(x_seq, params["w_ih"], params["w_hh"],
                          params["b_ih"], params["b_hh"])
    ref = jnp.reshape(ref, (B, C, -1))
    assert out.shape == ref.shape, (out.shape, ref.shape)
    max_err = float(jnp.max(jnp.abs(out - ref)))
    assert jnp.allclose(out, ref, atol=2e-2, rtol=2e-2), max_err

    print("KERNEL_OK")
</pallas_src>

<mosaic_0001>
module attributes {stable_mosaic.version = 11 : i64} {
  func.func @_lstm_kernel(%arg0: i32, %arg1: memref<16x32xbf16, #tpu.memory_space<vmem>>, %arg2: memref<32x128xbf16, #tpu.memory_space<vmem>>, %arg3: memref<32x128xbf16, #tpu.memory_space<vmem>>, %arg4: memref<1x128xf32, #tpu.memory_space<vmem>>, %arg5: memref<2x8x32xf32, #tpu.memory_space<vmem>>, %arg6: memref<16x128xf32, #tpu.memory_space<vmem>>) attributes {dimension_semantics = [#tpu.dimension_semantics<arbitrary>], iteration_bounds = array<i64: 1>, scalar_prefetch = 0 : i64, scratch_operands = 1 : i64, tpu.core_type = #tpu.core_type<tc>, window_params = [{pipeline_mode = #tpu.pipeline_mode<synchronous>, transform_indices = @transform_0, window_bounds = array<i64: 16, 32>}, {pipeline_mode = #tpu.pipeline_mode<synchronous>, transform_indices = @transform_1, window_bounds = array<i64: 32, 128>}, {pipeline_mode = #tpu.pipeline_mode<synchronous>, transform_indices = @transform_2, window_bounds = array<i64: 32, 128>}, {pipeline_mode = #tpu.pipeline_mode<synchronous>, transform_indices = @transform_3, window_bounds = array<i64: 1, 128>}, {pipeline_mode = #tpu.pipeline_mode<synchronous>, transform_indices = @transform_4, window_bounds = array<i64: 2, 8, 32>}]} {
    %c0 = arith.constant 0 : index
    %c0_0 = arith.constant 0 : index
    %0 = vector.load %arg1[%c0, %c0_0] : memref<16x32xbf16, #tpu.memory_space<vmem>>, vector<16x32xbf16>
    %c0_1 = arith.constant 0 : index
    %c0_2 = arith.constant 0 : index
    %1 = vector.load %arg2[%c0_1, %c0_2] : memref<32x128xbf16, #tpu.memory_space<vmem>>, vector<32x128xbf16>
    %cst = arith.constant dense<0.000000e+00> : vector<16x128xf32>
    %2 = tpu.matmul %0, %1, %cst {dimension_numbers = #tpu.dot_dimension_numbers<[1], [0], [0], [1], [0, 0, 1, 1], [], []>} : vector<16x32xbf16>, vector<32x128xbf16>, vector<16x128xf32> -> vector<16x128xf32>
    %c0_3 = arith.constant 0 : index
    %c0_4 = arith.constant 0 : index
    %3 = vector.load %arg4[%c0_3, %c0_4] : memref<1x128xf32, #tpu.memory_space<vmem>>, vector<1x128xf32>
    %4 = vector.broadcast %3 : vector<1x128xf32> to vector<16x128xf32>
    %5 = arith.addf %2, %4 : vector<16x128xf32>
    %c0_5 = arith.constant 0 : index
    %c0_6 = arith.constant 0 : index
    %6 = vector.load %arg6[%c0_5, %c0_6] : memref<16x128xf32, #tpu.memory_space<vmem>>, vector<16x128xf32>
    tpu.vector_store %arg6[%c0_5, %c0_6], %5 {strides = array<i32>} : memref<16x128xf32, #tpu.memory_space<vmem>>, vector<16x128xf32>,
    %c0_7 = arith.constant 0 : index
    %c0_8 = arith.constant 0 : index
    %7 = vector.load %arg3[%c0_7, %c0_8] : memref<32x128xbf16, #tpu.memory_space<vmem>>, vector<32x128xbf16>
    %cst_9 = arith.constant 0.000000e+00 : f32
    %8 = vector.broadcast %cst_9 : f32 to vector<8x32xf32>
    %cst_10 = arith.constant 0.000000e+00 : f32
    %9 = vector.broadcast %cst_10 : f32 to vector<8x32xf32>
    %c0_i32 = arith.constant 0 : i32
    %c8_i32 = arith.constant 8 : i32
    %10 = arith.muli %c0_i32, %c8_i32 : i32
    %11 = tpu.assume_multiple %10, 8 : i32
    %12 = arith.index_cast %11 : i32 to index
    %c0_11 = arith.constant 0 : index
    %13 = vector.load %arg6[%12, %c0_11] : memref<16x128xf32, #tpu.memory_space<vmem>>, vector<8x128xf32>
    %14 = arith.truncf %8 : vector<8x32xf32> to vector<8x32xbf16>
    %cst_12 = arith.constant dense<0.000000e+00> : vector<8x128xf32>
    %15 = tpu.matmul %14, %7, %cst_12 {dimension_numbers = #tpu.dot_dimension_numbers<[1], [0], [0], [1], [0, 0, 1, 1], [], []>} : vector<8x32xbf16>, vector<32x128xbf16>, vector<8x128xf32> -> vector<8x128xf32>
    %16 = arith.addf %13, %15 : vector<8x128xf32>
    %17 = vector.extract_strided_slice %16 {offsets = [0, 0], sizes = [8, 32], strides = [1, 1]} : vector<8x128xf32> to vector<8x32xf32>
    %18 = arith.negf %17 : vector<8x32xf32>
    %19 = math.exp %18 : vector<8x32xf32>
    %cst_13 = arith.constant 1.000000e+00 : f32
    %20 = vector.broadcast %cst_13 : f32 to vector<8x32xf32>
    %21 = arith.addf %20, %19 : vector<8x32xf32>
    %22 = arith.divf %20, %21 : vector<8x32xf32>
    %23 = vector.extract_strided_slice %16 {offsets = [0, 32], sizes = [8, 32], strides = [1, 1]} : vector<8x128xf32> to vector<8x32xf32>
    %24 = arith.negf %23 : vector<8x32xf32>
    %25 = math.exp %24 : vector<8x32xf32>
    %cst_14 = arith.constant 1.000000e+00 : f32
    %26 = vector.broadcast %cst_14 : f32 to vector<8x32xf32>
    %27 = arith.addf %26, %25 : vector<8x32xf32>
    %28 = arith.divf %26, %27 : vector<8x32xf32>
    %29 = vector.extract_strided_slice %16 {offsets = [0, 64], sizes = [8, 32], strides = [1, 1]} : vector<8x128xf32> to vector<8x32xf32>
    %30 = math.tanh %29 : vector<8x32xf32>
    %31 = vector.extract_strided_slice %16 {offsets = [0, 96], sizes = [8, 32], strides = [1, 1]} : vector<8x128xf32> to vector<8x32xf32>
    %32 = arith.negf %31 : vector<8x32xf32>
    %33 = math.exp %32 : vector<8x32xf32>
    %cst_15 = arith.constant 1.000000e+00 : f32
    %34 = vector.broadcast %cst_15 : f32 to vector<8x32xf32>
    %35 = arith.addf %34, %33 : vector<8x32xf32>
    %36 = arith.divf %34, %35 : vector<8x32xf32>
    %37 = arith.mulf %28, %9 : vector<8x32xf32>
    %38 = arith.mulf %22, %30 : vector<8x32xf32>
    %39 = arith.addf %37, %38 : vector<8x32xf32>
    %40 = math.tanh %39 : vector<8x32xf32>
    %41 = arith.mulf %36, %40 : vector<8x32xf32>
    %42 = vector.shape_cast %41 : vector<8x32xf32> to vector<1x8x32xf32>
    %43 = arith.index_cast %c0_i32 : i32 to index
    %c0_16 = arith.constant 0 : index
    %c0_17 = arith.constant 0 : index
    %44 = vector.load %arg5[%43, %c0_16, %c0_17] : memref<2x8x32xf32, #tpu.memory_space<vmem>>, vector<1x8x32xf32>
    tpu.vector_store %arg5[%43, %c0_16, %c0_17], %42 {strides = array<i32>} : memref<2x8x32xf32, #tpu.memory_space<vmem>>, vector<1x8x32xf32>,
    %c1_i32 = arith.constant 1 : i32
    %c8_i32_18 = arith.constant 8 : i32
    %45 = arith.muli %c1_i32, %c8_i32_18 : i32
    %46 = tpu.assume_multiple %45, 8 : i32
    %47 = arith.index_cast %46 : i32 to index
    %c0_19 = arith.constant 0 : index
    %48 = vector.load %arg6[%47, %c0_19] : memref<16x128xf32, #tpu.memory_space<vmem>>, vector<8x128xf32>
    %49 = arith.truncf %41 : vector<8x32xf32> to vector<8x32xbf16>
    %cst_20 = arith.constant dense<0.000000e+00> : vector<8x128xf32>
    %50 = tpu.matmul %49, %7, %cst_20 {dimension_numbers = #tpu.dot_dimension_numbers<[1], [0], [0], [1], [0, 0, 1, 1], [], []>} : vector<8x32xbf16>, vector<32x128xbf16>, vector<8x128xf32> -> vector<8x128xf32>
    %51 = arith.addf %48, %50 : vector<8x128xf32>
    %52 = vector.extract_strided_slice %51 {offsets = [0, 0], sizes = [8, 32], strides = [1, 1]} : vector<8x128xf32> to vector<8x32xf32>
    %53 = arith.negf %52 : vector<8x32xf32>
    %54 = math.exp %53 : vector<8x32xf32>
    %cst_21 = arith.constant 1.000000e+00 : f32
    %55 = vector.broadcast %cst_21 : f32 to vector<8x32xf32>
    %56 = arith.addf %55, %54 : vector<8x32xf32>
    %57 = arith.divf %55, %56 : vector<8x32xf32>
    %58 = vector.extract_strided_slice %51 {offsets = [0, 32], sizes = [8, 32], strides = [1, 1]} : vector<8x128xf32> to vector<8x32xf32>
    %59 = arith.negf %58 : vector<8x32xf32>
    %60 = math.exp %59 : vector<8x32xf32>
    %cst_22 = arith.constant 1.000000e+00 : f32
    %61 = vector.broadcast %cst_22 : f32 to vector<8x32xf32>
    %62 = arith.addf %61, %60 : vector<8x32xf32>
    %63 = arith.divf %61, %62 : vector<8x32xf32>
    %64 = vector.extract_strided_slice %51 {offsets = [0, 64], sizes = [8, 32], strides = [1, 1]} : vector<8x128xf32> to vector<8x32xf32>
    %65 = math.tanh %64 : vector<8x32xf32>
    %66 = vector.extract_strided_slice %51 {offsets = [0, 96], sizes = [8, 32], strides = [1, 1]} : vector<8x128xf32> to vector<8x32xf32>
    %67 = arith.negf %66 : vector<8x32xf32>
    %68 = math.exp %67 : vector<8x32xf32>
    %cst_23 = arith.constant 1.000000e+00 : f32
    %69 = vector.broadcast %cst_23 : f32 to vector<8x32xf32>
    %70 = arith.addf %69, %68 : vector<8x32xf32>
    %71 = arith.divf %69, %70 : vector<8x32xf32>
    %72 = arith.mulf %63, %39 : vector<8x32xf32>
    %73 = arith.mulf %57, %65 : vector<8x32xf32>
    %74 = arith.addf %72, %73 : vector<8x32xf32>
    %75 = math.tanh %74 : vector<8x32xf32>
    %76 = arith.mulf %71, %75 : vector<8x32xf32>
    %77 = vector.shape_cast %76 : vector<8x32xf32> to vector<1x8x32xf32>
    %78 = arith.index_cast %c1_i32 : i32 to index
    %c0_24 = arith.constant 0 : index
    %c0_25 = arith.constant 0 : index
    %79 = vector.load %arg5[%78, %c0_24, %c0_25] : memref<2x8x32xf32, #tpu.memory_space<vmem>>, vector<1x8x32xf32>
    tpu.vector_store %arg5[%78, %c0_24, %c0_25], %77 {strides = array<i32>} : memref<2x8x32xf32, #tpu.memory_space<vmem>>, vector<1x8x32xf32>,
    %c2_i32 = arith.constant 2 : i32
    return
  }
  func.func @transform_0(%arg0: i32) -> (i32, i32) {
    %c0_i32 = arith.constant 0 : i32
    %c0_i32_0 = arith.constant 0 : i32
    %c0_i32_1 = arith.constant 0 : i32
    return %c0_i32, %c0_i32_0 : i32, i32
  }
  func.func @transform_1(%arg0: i32) -> (i32, i32) {
    %c0_i32 = arith.constant 0 : i32
    %c0_i32_0 = arith.constant 0 : i32
    %c0_i32_1 = arith.constant 0 : i32
    return %c0_i32, %c0_i32_0 : i32, i32
  }
  func.func @transform_2(%arg0: i32) -> (i32, i32) {
    %c0_i32 = arith.constant 0 : i32
    %c0_i32_0 = arith.constant 0 : i32
    %c0_i32_1 = arith.constant 0 : i32
    return %c0_i32, %c0_i32_0 : i32, i32
  }
  func.func @transform_3(%arg0: i32) -> (i32, i32) {
    %c0_i32 = arith.constant 0 : i32
    %c0_i32_0 = arith.constant 0 : i32
    %c0_i32_1 = arith.constant 0 : i32
    return %c0_i32, %c0_i32_0 : i32, i32
  }
  func.func @transform_4(%arg0: i32) -> (i32, i32, i32) {
    %c0_i32 = arith.constant 0 : i32
    %c0_i32_0 = arith.constant 0 : i32
    %c0_i32_1 = arith.constant 0 : i32
    %c0_i32_2 = arith.constant 0 : i32
    return %c0_i32, %c0_i32_0, %c0_i32_1 : i32, i32, i32
  }
}

</mosaic_0001>

<bundles_post_ra>
// kernel: tpu_custom_call.1
= control target key start
LH: loop header
LB: loop body
LE: loop exit
PB: predicated region body
PF: predicated region fallthrough
CT: control target
= control target key end

     0   :  { %9 = vsyncpa [#allocation4], 0  ;;  %s615_s0 = inlined_call_operand.hbm [shape: bf16[16,32], index: 0, kind: input, shape index: {}]   ;;  %s616_s1 = inlined_call_operand.hbm [shape: bf16[32,128], index: 1, kind: input, shape index: {}]   ;;  %s617_s2 = inlined_call_operand.hbm [shape: bf16[32,128], index: 2, kind: input, shape index: {}]   ;;  %s618_s3 = inlined_call_operand.vmem [shape: f32[1,128], index: 3, kind: input, shape index: {}]   ;;  %s619_s4 = inlined_call_operand.hbm [shape: f32[2,8,32], index: 4, kind: output, shape index: {}]  }
   0x1   :  { %10 = vsyncpa [#allocation7], 0 }
   0x2   :  { %11 = vsyncpa [#allocation5], 0  ;;  %s495_s15 = smov [#allocation6]   ;;  %s496_s17 = smov [#allocation3]  }
   0x3   :  { %s29_s16 = sshll.u32 %s495_s15, 4  ;;  %s17_s18 = sshll.u32 %s496_s17, 4  ;;  %s30_s16 = int_to_ptr.vmem [resolvable:$true] %s29_s16  ;;  %s532_s18 = int_to_ptr.vmem [resolvable:$true] %s17_s18 }
   0x4   :  { %s401_s21 = scalar_lea.hbm %s616_s1, 256 }
   0x5   :  { %p402_p0 = scmp.ne.s32.totalorder %s616_s1, %s401_s21  ;;  %p405_p1 = scmp.lt.u32.totalorder %s401_s21, %s616_s1 }
   0x7   :  { %p407_p2 = pnand %p405_p1, %p402_p0 }
   0x9   :  { %410 = shalt.err (!%p407_p2)
}
   0xa   :  { %s411_s26 = scalar_lea.vmem %s30_s16, 256  ;;  %p416_p4 = scmp.lt.s32.totalorder %s30_s16, %s30_s16 }
   0xb   :  { %p412_p3 = scmp.ne.s32.totalorder %s30_s16, %s411_s26  ;;  %p417_p5 = scmp.lt.s32.totalorder %s411_s26, %s411_s26 }
   0xd   :  { %p418_p6 = por %p417_p5, %p416_p4 }
   0xf   :  { %p419_p7 = pnand %p418_p6, %p412_p3 }
  0x11   :  { %422 = shalt.err (!%p419_p7)
}
  0x12   :  { %s497_s27 = smov 64   ;;  %s498_s28 = smov 4  }
  0x13   :  { %35 = dma.hbm_to_vmem [thread:$0]  %s616_s1, 256, %s30_s16, [#allocation7], %s497_s27, %s497_s27, %s498_s28  }
  0x14   :  { %s423_s7 = scalar_lea.hbm %s615_s0, 128 }
  0x15   :  { %p424_p8 = scmp.ne.s32.totalorder %s615_s0, %s423_s7  ;;  %p427_p9 = scmp.lt.u32.totalorder %s423_s7, %s615_s0 }
  0x17   :  { %p429_p10 = pnand %p427_p9, %p424_p8 }
  0x19   :  { %432 = shalt.err (!%p429_p10)
}
  0x1a   :  { %s433_s12 = scalar_lea.vmem %s532_s18, 128  ;;  %p438_p12 = scmp.lt.s32.totalorder %s532_s18, %s532_s18 }
  0x1b   :  { %p434_p11 = scmp.ne.s32.totalorder %s532_s18, %s433_s12  ;;  %p439_p13 = scmp.lt.s32.totalorder %s433_s12, %s433_s12 }
  0x1d   :  { %p440_p0 = por %p439_p13, %p438_p12 }
  0x1f   :  { %p441_p1 = pnand %p440_p0, %p434_p11 }
  0x21   :  { %444 = shalt.err (!%p441_p1)
}
  0x22   :  { %23 = dma.hbm_to_vmem [thread:$0]  %s615_s0, 128, %s532_s18, [#allocation4], %s497_s27, %s497_s27, %s498_s28  }
  0x23   :  { %s499_s14 = smov [#allocation8]   ;;  %s445_s19 = scalar_lea.hbm %s617_s2, 256 }
  0x24   :  { %s41_s15 = sshll.u32 %s499_s14, 4  ;;  %p446_p2 = scmp.ne.s32.totalorder %s617_s2, %s445_s19  ;;  %s42_s15 = int_to_ptr.vmem [resolvable:$true] %s41_s15 }
  0x25   :  { %p449_p3 = scmp.lt.u32.totalorder %s445_s19, %s617_s2 }
  0x27   :  { %p451_p4 = pnand %p449_p3, %p446_p2 }
  0x29   :  { %454 = shalt.err (!%p451_p4)
}
  0x2a   :  { %s455_s24 = scalar_lea.vmem %s42_s15, 256  ;;  %p460_p6 = scmp.lt.s32.totalorder %s42_s15, %s42_s15 }
  0x2b   :  { %p456_p5 = scmp.ne.s32.totalorder %s42_s15, %s455_s24  ;;  %p461_p7 = scmp.lt.s32.totalorder %s455_s24, %s455_s24 }
  0x2d   :  { %p462_p8 = por %p461_p7, %p460_p6 }
  0x2f   :  { %p463_p9 = pnand %p462_p8, %p456_p5 }
  0x31   :  { %466 = shalt.err (!%p463_p9)
}
  0x32   :  { %47 = dma.hbm_to_vmem [thread:$0]  %s617_s2, 256, %s42_s15, [#allocation7], %s497_s27, %s497_s27, %s498_s28  }
  0x33   :  { %489 = dma.done.wait [#allocation4], 128  }
  0x34   :  { %490 = vsyncadd [#allocation4], 4294967168 }
  0x35   :  { %491 = dma.done.wait [#allocation7], 512  }
  0x36   :  { %492 = vsyncadd [#allocation7], 4294966784  ;;  %v500_v0 = vmov 0.0   ;;  %vm501_vm0 = vmmov 0   ;;  %v380_v1 = vld [vmem:[#allocation6] sm:$0xff]   ;;  %v381_v2 = vld [vmem:[#allocation8] sm:$0xff]  }
  0x37   :  { %344 = vmatprep.subr.bf16.mxu0 %v500_v0  ;;  %352 = vmatprep.subr.bf16.mxu1 %v500_v0  ;;  %v382_v3 = vld [vmem:[#allocation6 + $0x8] sm:$0xff]   ;;  %v383_v4 = vld [vmem:[#allocation8 + $0x8] sm:$0xff]   ;;  %vm90_vm1 = vcmask 261120   ;;  %v502_v6 = vmov 0   ;;  %s504_s26 = smov [#allocation9]  }
  0x38   :  { %348 = vmatprep.mubr.msk.bf16.mxu0 %vm501_vm0, %v500_v0  ;;  %356 = vmatprep.mubr.msk.bf16.mxu1 %vm501_vm0, %v500_v0  ;;  %v384_v5 = vld [vmem:[#allocation3] sm:$0xff]   ;;  %s312_s28 = sshll.u32 %s504_s26, 4  ;;  %s313_s28 = int_to_ptr.vmem [resolvable:$true] %s312_s28 }
  0x39   :  { %345 = vmatpush3.bf16.msra.mxu0 %v380_v1  ;;  %353 = vmatpush3.bf16.msra.mxu1 %v381_v2  ;;  %v325_v7 = vld [vmem:[%s618_s3] ss:$0 sm:$0xff]  ;;  %s503_s3 = smov 32   ;;  %s467_s29 = scalar_lea.vmem %s313_s28, 256 }
  0x3a   :  { %346 = vmatprep.subr.bf16.mxu0 %v500_v0  ;;  %354 = vmatprep.subr.bf16.mxu1 %v500_v0  ;;  %p468_p10 = scmp.ne.s32.totalorder %s313_s28, %s467_s29  ;;  %p472_p11 = scmp.lt.s32.totalorder %s313_s28, %s313_s28 }
  0x3b   :  { %p473_p12 = scmp.lt.s32.totalorder %s467_s29, %s467_s29 }
  0x3d   :  { %347 = vmatpush3.bf16.msra.mxu0 %v382_v3  ;;  %355 = vmatpush3.bf16.msra.mxu1 %v383_v4  ;;  %p474_p13 = por %p473_p12, %p472_p11 }
  0x3e   :  { %360 = vmatprep.subr.bf16.mxu0 %v500_v0 }
  0x3f   :  { %p475_p0 = pnand %p474_p13, %p468_p10 }
  0x40   :  { %349 = vmatmul.mubr.msk.bf16.vlgmr.msra.gmra.mrb[0].mxu0 %vm90_vm1, %v384_v5  ;;  %357 = vmatmul.mubr.bf16.vlgmr.msra.gmra.mrb[0].mxu1 %v502_v6 }
  0x41   :  { %361 = vmatpush3.bf16.msra.mxu0 %v381_v2  ;;  %364 = vmatprep.mubr.msk.bf16.mxu0 %vm501_vm0, %v500_v0 }
  0x42   :  { %362 = vmatprep.subr.bf16.mxu0 %v500_v0 }
  0x45   :  { %363 = vmatpush3.bf16.msra.mxu0 %v383_v4 }
 0x113   :  { %v128_v8 = vpop.f32.mrb[0].mxu0  ;;  %v191_v10 = vpop.f32.mrb[0].mxu1 }
 0x114   :  { %v129_v9 = vadd.f32 %v325_v7, %v128_v8  ;;  %v350_v11 = vpop.f32.mrb[1].mxu0  ;;  %v358_v12 = vpop.f32.mrb[1].mxu1 }
 0x115   :  { %v131_v13 = vpop.f32.mrb[2].mxu0  ;;  %v194_v16 = vpop.f32.mrb[2].mxu1 }
 0x116   :  { %v197_v14 = vadd.f32 %v191_v10, %v129_v9  ;;  %v132_v15 = vadd.f32 %v325_v7, %v131_v13  ;;  %v351_v17 = vpop.f32.mrb[3].mxu0  ;;  %v359_v18 = vpop.f32.mrb[3].mxu1 }
 0x118   :  { %385 = vtanh.f32 %v197_v14  ;;  %v332_v20 = vmul.f32 -1.442695, %v197_v14 }
 0x11a   :  { %387 = vpow2.f32 %v332_v20 }
 0x122   :  { %v386_v19 = vpop.eup %385 }
 0x123   :  { %207 = vrot.lane.b32.xlu0 %v386_v19, %s497_s27 }
 0x124   :  { %v388_v21 = vpop.eup %387 }
 0x125   :  { %v201_v22 = vadd.f32 1.0, %v388_v21 }
 0x127   :  { %389 = vrcp.f32 %v201_v22 }
 0x131   :  { %v390_v23 = vpop.eup %389 }
 0x132   :  { %v205_v26 = vmul.f32 0.0, %v390_v23 }
 0x195   :  { %v208_v24 = vpop.permute.xlu0 %207 }
 0x196   :  { %v210_v25 = vmul.f32 %v390_v23, %v208_v24 }
 0x198   :  { %212 = vrot.lane.b32.xlu0 %v210_v25, %s503_s3 }
 0x20a   :  { %v213_v27 = vpop.permute.xlu0 %212 }
 0x20b   :  { %v215_v28 = vadd.f32 %v213_v27, %v205_v26 }
 0x20d   :  { %391 = vtanh.f32 %v215_v28 }
 0x217   :  { %v392_v29 = vpop.eup %391 }
 0x218   :  { %218 = vrot.lane.b32.xlu1 %v392_v29, %s497_s27 }
 0x28a   :  { %v219_v30 = vpop.permute.xlu1 %218 }
 0x28b   :  { %v221_v31 = vmul.f32 %v390_v23, %v219_v30 }
 0x28d   :  { %v229_v32 = vpack.c.bf16 %v221_v31, %v221_v31 }
 0x28f   :  { %231 = vrot.lane.b32.xlu1 %v229_v32, %s503_s3 }
 0x301   :  { %v232_v33 = vpop.permute.xlu1 %231 }
 0x302   :  { %365 = vmatmul.mubr.msk.bf16.vlgmr.msra.gmra.mrb[4].mxu0 %vm90_vm1, %v232_v33 }
 0x3d5   :  { %v270_v34 = vpop.f32.mrb[4].mxu0 }
 0x3d6   :  { %v276_v35 = vadd.f32 %v270_v34, %v132_v15  ;;  %v366_v36 = vpop.f32.mrb[5].mxu0 }
 0x3d7   :  { %v273_v37 = vpop.f32.mrb[6].mxu0 }
 0x3d8   :  { %393 = vtanh.f32 %v276_v35  ;;  %v367_v38 = vpop.f32.mrb[7].mxu0  ;;  %v334_v40 = vmul.f32 -1.442695, %v276_v35 }
 0x3da   :  { %395 = vpow2.f32 %v334_v40 }
 0x3e2   :  { %v394_v39 = vpop.eup %393 }
 0x3e3   :  { %286 = vrot.lane.b32.xlu0 %v394_v39, %s497_s27 }
 0x3e4   :  { %v396_v41 = vpop.eup %395 }
 0x3e5   :  { %v280_v42 = vadd.f32 1.0, %v396_v41 }
 0x3e7   :  { %397 = vrcp.f32 %v280_v42 }
 0x3f1   :  { %v398_v43 = vpop.eup %397 }
 0x3f2   :  { %v284_v46 = vmul.f32 %v398_v43, %v215_v28 }
 0x455   :  { %v287_v44 = vpop.permute.xlu0 %286 }
 0x456   :  { %v289_v45 = vmul.f32 %v398_v43, %v287_v44 }
 0x458   :  { %291 = vrot.lane.b32.xlu1 %v289_v45, %s503_s3 }
 0x45c   :  { %223 = vrot.lane.b32.xlu1 %v221_v31, %s503_s3 }
 0x4ca   :  { %v292_v47 = vpop.permute.xlu1 %291 }
 0x4cb   :  { %v294_v48 = vadd.f32 %v292_v47, %v284_v46 }
 0x4cd   :  { %399 = vtanh.f32 %v294_v48 }
 0x4ce   :  { %v224_v49 = vpop.permute.xlu1 %223 }
 0x4cf   :  { %226 = vst.msk [vmem:[#allocation9] sm:$0xff] %vm90_vm1, %v224_v49 }
 0x4d7   :  { %v400_v50 = vpop.eup %399 }
 0x4d8   :  { %297 = vrot.lane.b32.xlu0 %v400_v50, %s497_s27 }
 0x54a   :  { %v298_v51 = vpop.permute.xlu0 %297 }
 0x54b   :  { %v300_v52 = vmul.f32 %v398_v43, %v298_v51 }
 0x54d   :  { %302 = vrot.lane.b32.xlu0 %v300_v52, %s503_s3 }
 0x5bf   :  { %v303_v53 = vpop.permute.xlu0 %302 }
 0x5c0   :  { %306 = vst.msk [vmem:[#allocation9 + $0x8] sm:$0xff] %vm90_vm1, %v303_v53 }
 0x5c1   :  { %478 = shalt.err (!%p475_p0)
}
 0x5c2   :  { %s479_s27 = scalar_lea.hbm %s619_s4, 256 }
 0x5c3   :  { %p480_p1 = scmp.ne.s32.totalorder %s619_s4, %s479_s27  ;;  %p483_p2 = scmp.lt.u32.totalorder %s479_s27, %s619_s4 }
 0x5c5   :  { %p485_p3 = pnand %p483_p2, %p480_p1 }
 0x5c7   :  { %488 = shalt.err (!%p485_p3)
}
 0x5c8   :  { %s505_s10 = smov 128   ;;  %s506_s11 = smov 8  }
 0x5c9   :  { %318 = dma.vmem_to_hbm [thread:$0]  %s313_s28, 256, %s619_s4, [#allocation5], %s505_s10, %s505_s10, %s506_s11  }
 0x5ca   :  { %493 = dma.done.wait [#allocation5], 256  }
 0x5cb   :  { %494 = vsyncadd [#allocation5], 4294967040 }
 0x5cc   :  { %322 = vsyncpa [#allocation4], 1 }
 0x5cd   :  { %323 = vsyncpa [#allocation7], 1 }
 0x5ce   :  { %324 = vsyncpa [#allocation5], 1 }

</bundles_post_ra>
